<compile_context>
chip_gen: v7x
topology: tpu7x:2x2x1
jax: 0.10.0
libtpu: 0.0.40
codegen_flags: <defaults>
</compile_context>

<pallas_src>
import functools

import jax
import jax.numpy as jnp
from jax import lax
from jax.experimental import pallas as pl
from jax.experimental.pallas import tpu as pltpu

_LANE = 128
_SUBLANE = 8


def _mxu_tile_default():
    """Native MXU row tile: 128 on v5e, 256 on v6e/v7x."""
    try:
        kind = jax.devices()[0].device_kind.lower()
    except Exception:
        return 256
    return 128 if "v5" in kind else 256


def _pick_tile(n, target):
    """Largest multiple-of-8 divisor of n that is <= target (falls back to n)."""
    t = min(n, target)
    t -= t % _SUBLANE
    while t >= _SUBLANE:
        if n % t == 0:
            return t
        t -= _SUBLANE
    return n


def _vmem_limit(block_bytes, extra_bytes):
    """Explicit scoped-VMEM budget: double-buffered blocks + temporaries."""
    est = int(2 * block_bytes * 1.5) + extra_bytes + (2 << 20)
    # Raise above the 16/32 MiB scoped defaults, stay under v7x's 64 MiB phys.
    return min(max(est, 32 << 20), 48 << 20)


# --------------------------------------------------------------------------
# Kernel 1: fused QKV projection  x[B,S,Din] @ Wqkv[Din,3H] -> q,k,v [B,S,H]
# --------------------------------------------------------------------------
def _qkv_proj_kernel(x_ref, wqkv_ref, q_ref, k_ref, v_ref, *, hidden_dim, scale):
    x = x_ref[0]                                                   # [TS, Din]
    qkv = jnp.dot(x, wqkv_ref[...],
                  preferred_element_type=jnp.float32)              # [TS, 3H] f32 acc
    # Fold 1/sqrt(H) into q once, at projection time.
    q_ref[0] = (qkv[:, :hidden_dim] * scale).astype(q_ref.dtype)
    k_ref[0] = qkv[:, hidden_dim:2 * hidden_dim].astype(k_ref.dtype)
    v_ref[0] = qkv[:, 2 * hidden_dim:].astype(v_ref.dtype)


# --------------------------------------------------------------------------
# Kernel 2: attention + output projection per (batch, query-tile)
# --------------------------------------------------------------------------
def _attn_kernel(q_ref, k_ref, v_ref, wo_ref, o_ref):
    q = q_ref[0]                                                   # [TQ, H] pre-scaled
    k = k_ref[0]                                                   # [S,  H]
    v = v_ref[0]                                                   # [S,  H]

    # q k^T without materializing a transpose: contract last dims on the MXU.
    scores = lax.dot_general(q, k, (((1,), (1,)), ((), ())),
                             preferred_element_type=jnp.float32)   # [TQ, S]

    # Numerically-stable softmax; normalize AFTER the PV matmul (TQ*H mults).
    m = jnp.max(scores, axis=-1, keepdims=True)
    p = jnp.exp(scores - m)                                        # <= 1, safe to downcast
    denom = jnp.sum(p, axis=-1, keepdims=True)

    attn = jnp.dot(p.astype(v.dtype), v,
                   preferred_element_type=jnp.float32)             # [TQ, H]
    attn = attn * pl.reciprocal(denom, approx=True)                # EUP slot, TQ*H mults

    out = jnp.dot(attn.astype(wo_ref.dtype), wo_ref[...],
                  preferred_element_type=jnp.float32)              # [TQ, Dout(_pad)]
    o_ref[0] = out.astype(o_ref.dtype)


# --------------------------------------------------------------------------
# Wrappers
# --------------------------------------------------------------------------
def prepare_transformer_params(wq, wk, wv, wo):
    """Fuse / pad the weights once (hoisted out of the per-step forward)."""
    H = wq.shape[1]
    Dout = wo.shape[1]
    wqkv = jnp.concatenate([wq, wk, wv], axis=1)                   # [Din, 3H]
    # Lane-pad Wo only when it is worth it: Dout >= 128 and not lane-aligned.
    if Dout % _LANE != 0 and Dout >= _LANE:
        dout_pad = pl.cdiv(Dout, _LANE) * _LANE
        wo_p = jnp.pad(wo, ((0, 0), (0, dout_pad - Dout)))
    else:
        wo_p = wo
    return {"wqkv": wqkv, "wo": wo_p, "hidden_dim": H, "output_dim": Dout}


def transformer_forward(x, params, *, q_tile=None, s_tile=None):
    """x: [B, S, input_dim] -> [B, S, output_dim]."""
    B, S, Din = x.shape
    H = params["hidden_dim"]
    Dout = params["output_dim"]
    wqkv = params["wqkv"]
    wo_p = params["wo"]
    Dout_p = wo_p.shape[1]
    scale = 1.0 / float(H) ** 0.5
    itemsize = jnp.dtype(x.dtype).itemsize

    target = _mxu_tile_default()
    q_tile = _pick_tile(S, q_tile or target)
    s_tile = _pick_tile(S, s_tile or target)
    n_q = S // q_tile
    n_s = S // s_tile

    # ---- 1) fused QKV projection ----------------------------------------
    proj_blocks = (s_tile * Din + Din * 3 * H + 3 * s_tile * H) * itemsize
    proj_extra = s_tile * 3 * H * 4                                # f32 qkv accumulator
    q, k, v = pl.pallas_call(
        functools.partial(_qkv_proj_kernel, hidden_dim=H, scale=scale),
        out_shape=tuple(jax.ShapeDtypeStruct((B, S, H), x.dtype) for _ in range(3)),
        grid_spec=pltpu.PrefetchScalarGridSpec(
            num_scalar_prefetch=0,
            grid=(B, n_s),
            in_specs=[
                pl.BlockSpec((1, s_tile, Din), lambda b, si: (b, si, 0)),
                pl.BlockSpec((Din, 3 * H), lambda b, si: (0, 0)),
            ],
            out_specs=[pl.BlockSpec((1, s_tile, H), lambda b, si: (b, si, 0))] * 3,
        ),
        compiler_params=pltpu.CompilerParams(
            dimension_semantics=("parallel", "parallel"),
            vmem_limit_bytes=_vmem_limit(proj_blocks, proj_extra)),
    )(x, wqkv)

    # ---- 2) attention + output projection --------------------------------
    attn_blocks = (q_tile * H + 2 * S * H + H * Dout_p + q_tile * Dout_p) * itemsize
    attn_extra = 2 * q_tile * S * 4 + 2 * q_tile * H * 4           # f32 scores/probs/attn
    out = pl.pallas_call(
        _attn_kernel,
        out_shape=jax.ShapeDtypeStruct((B, S, Dout_p), x.dtype),
        grid_spec=pltpu.PrefetchScalarGridSpec(
            num_scalar_prefetch=0,
            grid=(B, n_q),
            in_specs=[
                pl.BlockSpec((1, q_tile, H), lambda b, qi: (b, qi, 0)),
                # K/V block index depends only on b -> DMA skipped on qi revisits.
                pl.BlockSpec((1, S, H), lambda b, qi: (b, 0, 0)),
                pl.BlockSpec((1, S, H), lambda b, qi: (b, 0, 0)),
                pl.BlockSpec((H, Dout_p), lambda b, qi: (0, 0)),
            ],
            out_specs=pl.BlockSpec((1, q_tile, Dout_p), lambda b, qi: (b, qi, 0)),
        ),
        compiler_params=pltpu.CompilerParams(
            dimension_semantics=("parallel", "parallel"),
            vmem_limit_bytes=_vmem_limit(attn_blocks, attn_extra)),
    )(q, k, v, wo_p)

    if Dout_p != Dout:
        out = out[:, :, :Dout]
    return out


def _reference(x, wq, wk, wv, wo):
    # Plain-JAX reference for sanity checking.
    xf = x.astype(jnp.float32)
    q = xf @ wq.astype(jnp.float32)
    k = xf @ wk.astype(jnp.float32)
    v = xf @ wv.astype(jnp.float32)
    s = (q @ jnp.swapaxes(k, -1, -2)) / jnp.sqrt(jnp.float32(wq.shape[1]))
    p = jax.nn.softmax(s, axis=-1)
    return ((p @ v) @ wo.astype(jnp.float32)).astype(x.dtype)


if __name__ == "__main__":
    # Small shapes implied by the constructor signature.
    B, S = 2, 128
    input_dim, hidden_dim, output_dim = 32, 32, 32

    key = jax.random.PRNGKey(0)
    kx, kq, kk, kv, ko = jax.random.split(key, 5)

    x = jax.random.normal(kx, (B, S, input_dim), dtype=jnp.float32)
    wq = jax.random.normal(kq, (input_dim, hidden_dim), dtype=jnp.float32) * 0.05
    wk = jax.random.normal(kk, (input_dim, hidden_dim), dtype=jnp.float32) * 0.05
    wv = jax.random.normal(kv, (input_dim, hidden_dim), dtype=jnp.float32) * 0.05
    wo = jax.random.normal(ko, (hidden_dim, output_dim), dtype=jnp.float32) * 0.05

    params = prepare_transformer_params(wq, wk, wv, wo)   # fused/padded once
    out = transformer_forward(x, params)
    out = jax.block_until_ready(out)

    ref = _reference(x, wq, wk, wv, wo)
    assert out.shape == (B, S, output_dim)
    # Tolerance covers the EUP approx reciprocal in the softmax denominator.
    assert jnp.allclose(out, ref, atol=2e-3, rtol=2e-3), (
        float(jnp.max(jnp.abs(out - ref))))

    print("KERNEL_OK")
</pallas_src>

<mosaic_0001>
module attributes {stable_mosaic.version = 11 : i64} {
  func.func @_qkv_proj_kernel(%arg0: i32, %arg1: i32, %arg2: memref<1x128x32xf32, #tpu.memory_space<vmem>>, %arg3: memref<32x96xf32, #tpu.memory_space<vmem>>, %arg4: memref<1x128x32xf32, #tpu.memory_space<vmem>>, %arg5: memref<1x128x32xf32, #tpu.memory_space<vmem>>, %arg6: memref<1x128x32xf32, #tpu.memory_space<vmem>>) attributes {dimension_semantics = [#tpu.dimension_semantics<parallel>, #tpu.dimension_semantics<parallel>], iteration_bounds = array<i64: 2, 1>, scalar_prefetch = 0 : i64, scratch_operands = 0 : i64, tpu.core_type = #tpu.core_type<tc>, window_params = [{transform_indices = @transform_0, window_bounds = array<i64: 1, 128, 32>}, {pipeline_mode = #tpu.pipeline_mode<synchronous>, transform_indices = @transform_1, window_bounds = array<i64: 32, 96>}, {transform_indices = @transform_2, window_bounds = array<i64: 1, 128, 32>}, {transform_indices = @transform_3, window_bounds = array<i64: 1, 128, 32>}, {transform_indices = @transform_4, window_bounds = array<i64: 1, 128, 32>}]} {
    %c0 = arith.constant 0 : index
    %c0_0 = arith.constant 0 : index
    %c0_1 = arith.constant 0 : index
    %0 = vector.load %arg2[%c0, %c0_0, %c0_1] : memref<1x128x32xf32, #tpu.memory_space<vmem>>, vector<1x128x32xf32>
    %1 = vector.shape_cast %0 : vector<1x128x32xf32> to vector<128x32xf32>
    %c0_2 = arith.constant 0 : index
    %c0_3 = arith.constant 0 : index
    %2 = vector.load %arg3[%c0_2, %c0_3] : memref<32x96xf32, #tpu.memory_space<vmem>>, vector<32x96xf32>
    %cst = arith.constant dense<0.000000e+00> : vector<128x96xf32>
    %3 = tpu.matmul %1, %2, %cst {dimension_numbers = #tpu.dot_dimension_numbers<[1], [0], [0], [1], [0, 0, 1, 1], [], []>} : vector<128x32xf32>, vector<32x96xf32>, vector<128x96xf32> -> vector<128x96xf32>
    %4 = vector.extract_strided_slice %3 {offsets = [0, 0], sizes = [128, 32], strides = [1, 1]} : vector<128x96xf32> to vector<128x32xf32>
    %cst_4 = arith.constant 0.176776692 : f32
    %5 = vector.broadcast %cst_4 : f32 to vector<128x32xf32>
    %6 = arith.mulf %4, %5 : vector<128x32xf32>
    %c0_5 = arith.constant 0 : index
    %c0_6 = arith.constant 0 : index
    %c0_7 = arith.constant 0 : index
    %7 = vector.load %arg4[%c0_5, %c0_6, %c0_7] : memref<1x128x32xf32, #tpu.memory_space<vmem>>, vector<1x128x32xf32>
    %8 = vector.shape_cast %7 : vector<1x128x32xf32> to vector<128x32xf32>
    %9 = vector.shape_cast %6 : vector<128x32xf32> to vector<1x128x32xf32>
    tpu.vector_store %arg4[%c0_5, %c0_6, %c0_7], %9 {strides = array<i32>} : memref<1x128x32xf32, #tpu.memory_space<vmem>>, vector<1x128x32xf32>,
    %10 = vector.extract_strided_slice %3 {offsets = [0, 32], sizes = [128, 32], strides = [1, 1]} : vector<128x96xf32> to vector<128x32xf32>
    %c0_8 = arith.constant 0 : index
    %c0_9 = arith.constant 0 : index
    %c0_10 = arith.constant 0 : index
    %11 = vector.load %arg5[%c0_8, %c0_9, %c0_10] : memref<1x128x32xf32, #tpu.memory_space<vmem>>, vector<1x128x32xf32>
    %12 = vector.shape_cast %11 : vector<1x128x32xf32> to vector<128x32xf32>
    %13 = vector.shape_cast %10 : vector<128x32xf32> to vector<1x128x32xf32>
    tpu.vector_store %arg5[%c0_8, %c0_9, %c0_10], %13 {strides = array<i32>} : memref<1x128x32xf32, #tpu.memory_space<vmem>>, vector<1x128x32xf32>,
    %14 = vector.extract_strided_slice %3 {offsets = [0, 64], sizes = [128, 32], strides = [1, 1]} : vector<128x96xf32> to vector<128x32xf32>
    %c0_11 = arith.constant 0 : index
    %c0_12 = arith.constant 0 : index
    %c0_13 = arith.constant 0 : index
    %15 = vector.load %arg6[%c0_11, %c0_12, %c0_13] : memref<1x128x32xf32, #tpu.memory_space<vmem>>, vector<1x128x32xf32>
    %16 = vector.shape_cast %15 : vector<1x128x32xf32> to vector<128x32xf32>
    %17 = vector.shape_cast %14 : vector<128x32xf32> to vector<1x128x32xf32>
    tpu.vector_store %arg6[%c0_11, %c0_12, %c0_13], %17 {strides = array<i32>} : memref<1x128x32xf32, #tpu.memory_space<vmem>>, vector<1x128x32xf32>,
    return
  }
  func.func @transform_0(%arg0: i32, %arg1: i32) -> (i32, i32, i32) {
    %c0_i32 = arith.constant 0 : i32
    %c0_i32_0 = arith.constant 0 : i32
    return %arg0, %arg1, %c0_i32 : i32, i32, i32
  }
  func.func @transform_1(%arg0: i32, %arg1: i32) -> (i32, i32) {
    %c0_i32 = arith.constant 0 : i32
    %c0_i32_0 = arith.constant 0 : i32
    %c0_i32_1 = arith.constant 0 : i32
    return %c0_i32, %c0_i32_0 : i32, i32
  }
  func.func @transform_2(%arg0: i32, %arg1: i32) -> (i32, i32, i32) {
    %c0_i32 = arith.constant 0 : i32
    %c0_i32_0 = arith.constant 0 : i32
    return %arg0, %arg1, %c0_i32 : i32, i32, i32
  }
  func.func @transform_3(%arg0: i32, %arg1: i32) -> (i32, i32, i32) {
    %c0_i32 = arith.constant 0 : i32
    %c0_i32_0 = arith.constant 0 : i32
    return %arg0, %arg1, %c0_i32 : i32, i32, i32
  }
  func.func @transform_4(%arg0: i32, %arg1: i32) -> (i32, i32, i32) {
    %c0_i32 = arith.constant 0 : i32
    %c0_i32_0 = arith.constant 0 : i32
    return %arg0, %arg1, %c0_i32 : i32, i32, i32
  }
}

</mosaic_0001>

<bundles_post_ra>
// kernel: tpu_custom_call.1
= control target key start
LH: loop header
LB: loop body
LE: loop exit
PB: predicated region body
PF: predicated region fallthrough
CT: control target
= control target key end

     0   :  { %s1037_s15 = smov 0   ;;  %s1039_s16 = smov 0   ;;  %s1262_s0 = inlined_call_operand.vmem [shape: f32[2,128,32], index: 0, kind: input, shape index: {}]   ;;  %s1263_s1 = inlined_call_operand.vmem [shape: f32[32,96], index: 1, kind: input, shape index: {}]   ;;  %s1264_s2 = inlined_call_operand.vmem [shape: f32[2,128,32], index: 2, kind: output, shape index: {0}]   ;;  %s1265_s3 = inlined_call_operand.vmem [shape: f32[2,128,32], index: 3, kind: output, shape index: {1}]   ;;  %s1266_s4 = inlined_call_operand.vmem [shape: f32[2,128,32], index: 4, kind: output, shape index: {2}]  }
   0x1   :  { %s1041_s17 = smov 0  }
   0x2 LB: > { %s27_s18 = sadd.s32 1, %s1004_s16  ;;  %p865_p0 = scmp.ge.s32.totalorder %s1008_s17, 1  ;;  %s1008_s17 = sphi %s1041_s17, %s15_s17   ;;  %s1004_s16 = sphi %s1039_s16, %s1268_s16   ;;  %s1000_s15 = sphi %s1037_s15, %s1267_s15  }
   0x3   : > { %p29_p1 = scmp.ge.s32.totalorder %s27_s18, 2  ;;  %p192_p2 = scmp.lt.s32.totalorder %s1008_s17, 3 }
   0x5   : > { %s1270_s18 = smov (%p29_p1, %s27_s18), 0  ;;  %p193_p3 = pnand %p865_p0, %p192_p2 }
   0x6   : > { %v300_v0 = vld [vmem:[%s1263_s1] sm:$0xff] (!%p193_p3)  ;;  %v301_v1 = vld [vmem:[%s1263_s1 + $0x8] sm:$0xff] (!%p193_p3)  ;;  %v302_v2 = vld [vmem:[%s1263_s1 + $0x10] sm:$0xff] (!%p193_p3)  ;;  %p245_p4 = scmp.lt.s32.totalorder (!%p193_p3), %s1000_s15, 1  ;;  %vm304_vm0 = vcmask (!%p193_p3), 261120   ;;  %s1010_s8 = smov (!%p193_p3), 96  }
   0x7   : > { %196 = sbr.rel (%p193_p3) target bundleno = 408 (0x198), region = 28  ;;  %v948_v3 = vpack.c.bf16 (!%p193_p3), %v301_v1, %v300_v0  ;;  %v303_v4 = vld [vmem:[%s1263_s1 + $0x18] sm:$0xff] (!%p193_p3)  ;;  %s1011_s9 = smov (!%p193_p3), 64  }
   0x8   : > { %v952_v5 = vpack.c.bf16 (!%p193_p3), %v303_v4, %v302_v2 }
   0x9   : > { %949 = vmatprep.subr.bf16.mxu0 (!%p193_p3), %v948_v3  ;;  %956 = vmatprep.subr.bf16.mxu1 (!%p193_p3), %v948_v3 }
   0xa   : > { %951 = vmatpush3.bf16.msra.mxu0 (!%p193_p3), %v948_v3  ;;  %958 = vmatpush3.bf16.msra.mxu1 (!%p193_p3), %v948_v3 }
   0xb   : > { %953 = vmatprep.subr.bf16.mxu0 (!%p193_p3), %v952_v5  ;;  %957 = vmatprep.subr.bf16.mxu1 (!%p193_p3), %v952_v5 }
   0xe   : > { %s1272_s15 = smov (!%p245_p4, %s1000_s15), 1  ;;  %955 = vmatpush3.bf16.msra.mxu0 %v952_v5  ;;  %959 = vmatpush3.bf16.msra.mxu1 %v952_v5 }
   0xf   : > { %s1067_s27 = sshll.u32 %s1272_s15, 7 }
  0x10   : > { %s1073_s30 = scalar_lea.vmem %s1262_s0, %s1067_s27  ;;  %s1111_s7 = scalar_lea.vmem %s1264_s2, %s1067_s27 }
  0x11   : > { %v284_v6 = vld [vmem:[%s1073_s30] sm:$0xff]  ;;  %v285_v8 = vld [vmem:[%s1073_s30 + $0x8] sm:$0xff]  ;;  %v286_v10 = vld [vmem:[%s1073_s30 + $0x10] sm:$0xff]  ;;  %s1181_s12 = scalar_lea.vmem %s1265_s3, %s1067_s27  ;;  %s1191_s15 = scalar_lea.vmem %s1266_s4, %s1067_s27 }
  0x12   : > { %v292_v7 = vld [vmem:[%s1073_s30 + $0x40] sm:$0xff]  ;;  %924 = vmatprep.mubr.msk.f32.mxu0 %vm304_vm0, %v284_v6  ;;  %v293_v9 = vld [vmem:[%s1073_s30 + $0x48] sm:$0xff]  ;;  %v294_v11 = vld [vmem:[%s1073_s30 + $0x50] sm:$0xff] }
  0x13   : > { %936 = vmatprep.mubr.msk.f32.mxu1 %vm304_vm0, %v292_v7  ;;  %925 = vmatmul.mubr.msk.f32.vlgmr.msra.gmra.mrb[0].mxu0 %vm304_vm0, %v285_v8  ;;  %v287_v12 = vld [vmem:[%s1073_s30 + $0x18] sm:$0xff]  ;;  %v288_v14 = vld [vmem:[%s1073_s30 + $0x20] sm:$0xff]  ;;  %v289_v16 = vld [vmem:[%s1073_s30 + $0x28] sm:$0xff] }
  0x14   : > { %937 = vmatmul.mubr.msk.f32.vlgmr.msra.gmra.mrb[0].mxu1 %vm304_vm0, %v293_v9  ;;  %927 = vmatprep.mubr.msk.f32.mxu0 %vm304_vm0, %v286_v10  ;;  %v295_v13 = vld [vmem:[%s1073_s30 + $0x58] sm:$0xff]  ;;  %v296_v15 = vld [vmem:[%s1073_s30 + $0x60] sm:$0xff]  ;;  %v297_v17 = vld [vmem:[%s1073_s30 + $0x68] sm:$0xff] }
  0x15   : > { %939 = vmatprep.mubr.msk.f32.mxu1 %vm304_vm0, %v294_v11  ;;  %v290_v18 = vld [vmem:[%s1073_s30 + $0x30] sm:$0xff]  ;;  %v291_v20 = vld [vmem:[%s1073_s30 + $0x38] sm:$0xff] }
  0x16   : > { %v298_v19 = vld [vmem:[%s1073_s30 + $0x70] sm:$0xff]  ;;  %v299_v21 = vld [vmem:[%s1073_s30 + $0x78] sm:$0xff] }
  0x17   : > { %928 = vmatmul.mubr.msk.f32.gmra.mrb[2].mxu0 %vm304_vm0, %v287_v12 }
  0x18   : > { %940 = vmatmul.mubr.msk.f32.gmra.mrb[2].mxu1 %vm304_vm0, %v295_v13  ;;  %930 = vmatprep.mubr.msk.f32.mxu0 %vm304_vm0, %v288_v14 }
  0x19   : > { %942 = vmatprep.mubr.msk.f32.mxu1 %vm304_vm0, %v296_v15 }
  0x1b   : > { %931 = vmatmul.mubr.msk.f32.gmra.mrb[4].mxu0 %vm304_vm0, %v289_v16 }
  0x1c   : > { %943 = vmatmul.mubr.msk.f32.gmra.mrb[4].mxu1 %vm304_vm0, %v297_v17  ;;  %933 = vmatprep.mubr.msk.f32.mxu0 %vm304_vm0, %v290_v18 }
  0x1d   : > { %945 = vmatprep.mubr.msk.f32.mxu1 %vm304_vm0, %v298_v19 }
  0x1f   : > { %934 = vmatmul.mubr.msk.f32.gmra.mrb[6].mxu0 %vm304_vm0, %v291_v20 }
  0x20   : > { %946 = vmatmul.mubr.msk.f32.gmra.mrb[6].mxu1 %vm304_vm0, %v299_v21 }
  0xe6   : > { %v926_v22 = vpop.f32.mrb[0].mxu0 }
  0xe7   : > { %v938_v23 = vpop.f32.mrb[0].mxu1  ;;  %v499_v24 = vmul.f32 0.17677669, %v926_v22  ;;  %548 = vrot.lane.b32.xlu0 %v926_v22, %s1010_s8  ;;  %v419_v27 = vpop.f32.mrb[1].mxu0 }
  0xe8   : > { %v507_v25 = vmul.f32 0.17677669, %v938_v23  ;;  %564 = vrot.lane.b32.xlu1 %v938_v23, %s1010_s8  ;;  %v459_v26 = vpop.f32.mrb[1].mxu1  ;;  %v498_v29 = vmul.f32 0.17677669, %v419_v27 }
  0xe9   : > { %v506_v28 = vmul.f32 0.17677669, %v459_v26  ;;  %515 = vst.msk [vmem:[%s1111_s7 + $0x8] sm:$0xff] %vm304_vm0, %v499_v24 }
  0xea   : > { %523 = vst.msk [vmem:[%s1111_s7 + $0x48] sm:$0xff] %vm304_vm0, %v507_v25  ;;  %514 = vst.msk [vmem:[%s1111_s7] sm:$0xff] %vm304_vm0, %v498_v29  ;;  %v929_v30 = vpop.f32.mrb[2].mxu0 }
  0xeb   : > { %522 = vst.msk [vmem:[%s1111_s7 + $0x40] sm:$0xff] %vm304_vm0, %v506_v28  ;;  %v941_v31 = vpop.f32.mrb[2].mxu1  ;;  %546 = vrot.lane.b32.xlu0 %v419_v27, %s1010_s8  ;;  %v501_v32 = vmul.f32 0.17677669, %v929_v30  ;;  %v429_v33 = vpop.f32.mrb[3].mxu0 }
  0xec   : > { %612 = vrot.lane.b32.xlu1 %v926_v22, %s1011_s9  ;;  %v509_v34 = vmul.f32 0.17677669, %v941_v31  ;;  %v469_v35 = vpop.f32.mrb[3].mxu1  ;;  %v500_v36 = vmul.f32 0.17677669, %v429_v33 }
  0xed   : > { %v508_v37 = vmul.f32 0.17677669, %v469_v35  ;;  %517 = vst.msk [vmem:[%s1111_s7 + $0x18] sm:$0xff] %vm304_vm0, %v501_v32 }
  0xee   : > { %525 = vst.msk [vmem:[%s1111_s7 + $0x58] sm:$0xff] %vm304_vm0, %v509_v34  ;;  %516 = vst.msk [vmem:[%s1111_s7 + $0x10] sm:$0xff] %vm304_vm0, %v500_v36  ;;  %v932_v38 = vpop.f32.mrb[4].mxu0 }
  0xef   : > { %524 = vst.msk [vmem:[%s1111_s7 + $0x50] sm:$0xff] %vm304_vm0, %v508_v37  ;;  %v944_v39 = vpop.f32.mrb[4].mxu1  ;;  %562 = vrot.lane.b32.xlu0 %v459_v26, %s1010_s8  ;;  %v503_v40 = vmul.f32 0.17677669, %v932_v38  ;;  %v439_v41 = vpop.f32.mrb[5].mxu0 }
  0xf0   : > { %628 = vrot.lane.b32.xlu1 %v938_v23, %s1011_s9  ;;  %v511_v42 = vmul.f32 0.17677669, %v944_v39  ;;  %v479_v43 = vpop.f32.mrb[5].mxu1  ;;  %v502_v44 = vmul.f32 0.17677669, %v439_v41 }
  0xf1   : > { %v510_v45 = vmul.f32 0.17677669, %v479_v43  ;;  %519 = vst.msk [vmem:[%s1111_s7 + $0x28] sm:$0xff] %vm304_vm0, %v503_v40 }
  0xf2   : > { %527 = vst.msk [vmem:[%s1111_s7 + $0x68] sm:$0xff] %vm304_vm0, %v511_v42  ;;  %518 = vst.msk [vmem:[%s1111_s7 + $0x20] sm:$0xff] %vm304_vm0, %v502_v44  ;;  %v935_v46 = vpop.f32.mrb[6].mxu0 }
  0xf3   : > { %526 = vst.msk [vmem:[%s1111_s7 + $0x60] sm:$0xff] %vm304_vm0, %v510_v45  ;;  %v947_v47 = vpop.f32.mrb[6].mxu1  ;;  %610 = vrot.lane.b32.xlu0 %v419_v27, %s1011_s9  ;;  %v505_v48 = vmul.f32 0.17677669, %v935_v46  ;;  %v449_v49 = vpop.f32.mrb[7].mxu0 }
  0xf4   : > { %552 = vrot.lane.b32.xlu1 %v929_v30, %s1010_s8  ;;  %v513_v50 = vmul.f32 0.17677669, %v947_v47  ;;  %v489_v51 = vpop.f32.mrb[7].mxu1  ;;  %v504_v52 = vmul.f32 0.17677669, %v449_v49 }
  0xf5   : > { %v512_v53 = vmul.f32 0.17677669, %v489_v51  ;;  %521 = vst.msk [vmem:[%s1111_s7 + $0x38] sm:$0xff] %vm304_vm0, %v505_v48 }
  0xf6   : > { %529 = vst.msk [vmem:[%s1111_s7 + $0x78] sm:$0xff] %vm304_vm0, %v513_v50  ;;  %520 = vst.msk [vmem:[%s1111_s7 + $0x30] sm:$0xff] %vm304_vm0, %v504_v52 }
  0xf7   : > { %528 = vst.msk [vmem:[%s1111_s7 + $0x70] sm:$0xff] %vm304_vm0, %v512_v53  ;;  %626 = vrot.lane.b32.xlu0 %v459_v26, %s1011_s9 }
  0xf8   : > { %568 = vrot.lane.b32.xlu1 %v941_v31, %s1010_s8 }
  0xfb   : > { %566 = vrot.lane.b32.xlu0 %v469_v35, %s1010_s8 }
  0xfc   : > { %616 = vrot.lane.b32.xlu1 %v929_v30, %s1011_s9 }
  0xff   : > { %614 = vrot.lane.b32.xlu0 %v429_v33, %s1011_s9 }
 0x100   : > { %632 = vrot.lane.b32.xlu1 %v941_v31, %s1011_s9 }
 0x103   : > { %630 = vrot.lane.b32.xlu0 %v469_v35, %s1011_s9 }
 0x104   : > { %550 = vrot.lane.b32.xlu1 %v429_v33, %s1010_s8 }
 0x107   : > { %554 = vrot.lane.b32.xlu0 %v439_v41, %s1010_s8 }
 0x108   : > { %556 = vrot.lane.b32.xlu1 %v932_v38, %s1010_s8 }
 0x10b   : > { %570 = vrot.lane.b32.xlu0 %v479_v43, %s1010_s8 }
 0x10c   : > { %572 = vrot.lane.b32.xlu1 %v944_v39, %s1010_s8 }
 0x10f   : > { %618 = vrot.lane.b32.xlu0 %v439_v41, %s1011_s9 }
 0x110   : > { %620 = vrot.lane.b32.xlu1 %v932_v38, %s1011_s9 }
 0x113   : > { %634 = vrot.lane.b32.xlu0 %v479_v43, %s1011_s9 }
 0x114   : > { %636 = vrot.lane.b32.xlu1 %v944_v39, %s1011_s9 }
 0x117   : > { %558 = vrot.lane.b32.xlu0 %v449_v49, %s1010_s8 }
 0x118   : > { %560 = vrot.lane.b32.xlu1 %v935_v46, %s1010_s8 }
 0x11b   : > { %574 = vrot.lane.b32.xlu0 %v489_v51, %s1010_s8 }
 0x11c   : > { %576 = vrot.lane.b32.xlu1 %v947_v47, %s1010_s8 }
 0x11f   : > { %622 = vrot.lane.b32.xlu0 %v449_v49, %s1011_s9 }
 0x120   : > { %624 = vrot.lane.b32.xlu1 %v935_v46, %s1011_s9 }
 0x123   : > { %638 = vrot.lane.b32.xlu0 %v489_v51, %s1011_s9 }
 0x124   : > { %640 = vrot.lane.b32.xlu1 %v947_v47, %s1011_s9 }
 0x159   : > { %v549_v55 = vpop.permute.xlu0 %548 }
 0x15a   : > { %v565_v54 = vpop.permute.xlu1 %564  ;;  %595 = vst.msk [vmem:[%s1181_s12 + $0x8] sm:$0xff] %vm304_vm0, %v549_v55 }
 0x15b   : > { %603 = vst.msk [vmem:[%s1181_s12 + $0x48] sm:$0xff] %vm304_vm0, %v565_v54 }
 0x15d   : > { %v547_v57 = vpop.permute.xlu0 %546 }
 0x15e   : > { %v613_v56 = vpop.permute.xlu1 %612  ;;  %594 = vst.msk [vmem:[%s1181_s12] sm:$0xff] %vm304_vm0, %v547_v57 }
 0x15f   : > { %659 = vst.msk [vmem:[%s1191_s15 + $0x8] sm:$0xff] %vm304_vm0, %v613_v56 }
 0x161   : > { %v563_v59 = vpop.permute.xlu0 %562 }
 0x162   : > { %v629_v58 = vpop.permute.xlu1 %628  ;;  %602 = vst.msk [vmem:[%s1181_s12 + $0x40] sm:$0xff] %vm304_vm0, %v563_v59 }
 0x163   : > { %667 = vst.msk [vmem:[%s1191_s15 + $0x48] sm:$0xff] %vm304_vm0, %v629_v58 }
 0x165   : > { %v611_v60 = vpop.permute.xlu0 %610 }
 0x166   : > { %v553_v61 = vpop.permute.xlu1 %552  ;;  %658 = vst.msk [vmem:[%s1191_s15] sm:$0xff] %vm304_vm0, %v611_v60 }
 0x167   : > { %597 = vst.msk [vmem:[%s1181_s12 + $0x18] sm:$0xff] %vm304_vm0, %v553_v61 }
 0x169   : > { %v627_v62 = vpop.permute.xlu0 %626 }
 0x16a   : > { %v569_v63 = vpop.permute.xlu1 %568  ;;  %666 = vst.msk [vmem:[%s1191_s15 + $0x40] sm:$0xff] %vm304_vm0, %v627_v62 }
 0x16b   : > { %605 = vst.msk [vmem:[%s1181_s12 + $0x58] sm:$0xff] %vm304_vm0, %v569_v63 }
 0x16d   : > { %v567_v0 = vpop.permute.xlu0 %566 }
 0x16e   : > { %v617_v1 = vpop.permute.xlu1 %616  ;;  %604 = vst.msk [vmem:[%s1181_s12 + $0x50] sm:$0xff] %vm304_vm0, %v567_v0 }
 0x16f   : > { %661 = vst.msk [vmem:[%s1191_s15 + $0x18] sm:$0xff] %vm304_vm0, %v617_v1 }
 0x171   : > { %v615_v3 = vpop.permute.xlu0 %614 }
 0x172   : > { %v633_v2 = vpop.permute.xlu1 %632  ;;  %660 = vst.msk [vmem:[%s1191_s15 + $0x10] sm:$0xff] %vm304_vm0, %v615_v3 }
 0x173   : > { %669 = vst.msk [vmem:[%s1191_s15 + $0x58] sm:$0xff] %vm304_vm0, %v633_v2 }
 0x175   : > { %v631_v4 = vpop.permute.xlu0 %630 }
 0x176   : > { %v551_v5 = vpop.permute.xlu1 %550  ;;  %668 = vst.msk [vmem:[%s1191_s15 + $0x50] sm:$0xff] %vm304_vm0, %v631_v4 }
 0x177   : > { %596 = vst.msk [vmem:[%s1181_s12 + $0x10] sm:$0xff] %vm304_vm0, %v551_v5 }
 0x179   : > { %v555_v7 = vpop.permute.xlu0 %554 }
 0x17a   : > { %v557_v6 = vpop.permute.xlu1 %556  ;;  %598 = vst.msk [vmem:[%s1181_s12 + $0x20] sm:$0xff] %vm304_vm0, %v555_v7 }
 0x17b   : > { %599 = vst.msk [vmem:[%s1181_s12 + $0x28] sm:$0xff] %vm304_vm0, %v557_v6 }
 0x17d   : > { %v571_v9 = vpop.permute.xlu0 %570 }
 0x17e   : > { %v573_v8 = vpop.permute.xlu1 %572  ;;  %606 = vst.msk [vmem:[%s1181_s12 + $0x60] sm:$0xff] %vm304_vm0, %v571_v9 }
 0x17f   : > { %607 = vst.msk [vmem:[%s1181_s12 + $0x68] sm:$0xff] %vm304_vm0, %v573_v8 }
 0x181   : > { %v619_v11 = vpop.permute.xlu0 %618 }
 0x182   : > { %v621_v10 = vpop.permute.xlu1 %620  ;;  %662 = vst.msk [vmem:[%s1191_s15 + $0x20] sm:$0xff] %vm304_vm0, %v619_v11 }
 0x183   : > { %663 = vst.msk [vmem:[%s1191_s15 + $0x28] sm:$0xff] %vm304_vm0, %v621_v10 }
 0x185   : > { %v635_v13 = vpop.permute.xlu0 %634 }
 0x186   : > { %v637_v12 = vpop.permute.xlu1 %636  ;;  %670 = vst.msk [vmem:[%s1191_s15 + $0x60] sm:$0xff] %vm304_vm0, %v635_v13 }
 0x187   : > { %671 = vst.msk [vmem:[%s1191_s15 + $0x68] sm:$0xff] %vm304_vm0, %v637_v12 }
 0x189   : > { %v559_v15 = vpop.permute.xlu0 %558 }
 0x18a   : > { %v561_v14 = vpop.permute.xlu1 %560  ;;  %600 = vst.msk [vmem:[%s1181_s12 + $0x30] sm:$0xff] %vm304_vm0, %v559_v15 }
 0x18b   : > { %601 = vst.msk [vmem:[%s1181_s12 + $0x38] sm:$0xff] %vm304_vm0, %v561_v14 }
 0x18d   : > { %v575_v17 = vpop.permute.xlu0 %574 }
 0x18e   : > { %v577_v16 = vpop.permute.xlu1 %576  ;;  %608 = vst.msk [vmem:[%s1181_s12 + $0x70] sm:$0xff] %vm304_vm0, %v575_v17 }
 0x18f   : > { %609 = vst.msk [vmem:[%s1181_s12 + $0x78] sm:$0xff] %vm304_vm0, %v577_v16 }
 0x191   : > { %v623_v19 = vpop.permute.xlu0 %622 }
 0x192   : > { %v625_v18 = vpop.permute.xlu1 %624  ;;  %664 = vst.msk [vmem:[%s1191_s15 + $0x30] sm:$0xff] %vm304_vm0, %v623_v19 }
 0x193   : > { %665 = vst.msk [vmem:[%s1191_s15 + $0x38] sm:$0xff] %vm304_vm0, %v625_v18 }
 0x195   : > { %v639_v21 = vpop.permute.xlu0 %638 }
 0x196   : > { %v641_v20 = vpop.permute.xlu1 %640  ;;  %672 = vst.msk [vmem:[%s1191_s15 + $0x70] sm:$0xff] %vm304_vm0, %v639_v21 }
 0x197   : > { %673 = vst.msk [vmem:[%s1191_s15 + $0x78] sm:$0xff] %vm304_vm0, %v641_v20 }
 0x198 PF: > { %s15_s17 = sadd.s32 1, %s1008_s17   ;;  %s1267_s15 = smov %s1004_s16 }
 0x199   : > { %p12_p5 = scmp.ge.s32.totalorder %s15_s17, 4   ;;  %s1268_s16 = smov %s1270_s18 }
 0x19b   :  { %14 = sbr.rel (!%p12_p5) target bundleno = 2 (0x2), region = 82 }

</bundles_post_ra>
